<compile_context>
chip_gen: v7x
topology: tpu7x:2x2x1
jax: 0.10.0
libtpu: 0.0.40
codegen_flags: <defaults>
</compile_context>

<pallas_src>
import functools

import jax
import jax.numpy as jnp
from jax import lax
from jax.experimental import pallas as pl
from jax.experimental.pallas import tpu as pltpu

_IGNORE_INDEX = -100  # torch.nn.CrossEntropyLoss default


def _round_up(x, m):
    return ((x + m - 1) // m) * m


def _write_partial_slab(out_ref, partial):
    """Write a lane-dense (1, 8, 128) f32 slab with `partial` at [0, 0, 0], zeros elsewhere.

    Keeps the store unmasked/lane-dense while letting the wrapper reduce the whole slab
    with a plain jnp.sum (exact, no strided gather)."""
    slab = jnp.full((1, 8, 128), partial, dtype=jnp.float32)
    sub = lax.broadcasted_iota(jnp.int32, (1, 8, 128), 1)
    lane = lax.broadcasted_iota(jnp.int32, (1, 8, 128), 2)
    out_ref[...] = jnp.where((sub == 0) & (lane == 0), slab, 0.0)


def _ce_single_pass_kernel(logits_ref, labels_ref, out_ref, *,
                           n_rows, n_cols, tile_n, tile_c, ignore_index):
    """Whole class dim in one block: no scratch, single-pass logsumexp."""
    i = pl.program_id(0)                                     # row-tile index ("parallel")

    x = logits_ref[...]                                      # (tile_n, tile_c), input dtype
    labels = labels_ref[...]                                 # (tile_n, 1) int32

    col = lax.broadcasted_iota(jnp.int32, (1, tile_c), 1)    # broadcast in the compare
    col_mask_needed = tile_c != n_cols                       # static Python branch

    # logits[row, label] gather via compare + select (no one-hot matmul, no blanket cast)
    picked = jnp.sum(jnp.where(col == labels, x, jnp.zeros_like(x)),
                     axis=-1, keepdims=True).astype(jnp.float32)     # (tile_n, 1)

    if col_mask_needed:
        col_valid = col < n_cols
        x_for_max = jnp.where(col_valid, x, jnp.finfo(x.dtype).min)
    else:
        x_for_max = x
    row_max = jnp.max(x_for_max, axis=-1, keepdims=True)             # input dtype
    e = jnp.exp((x - row_max).astype(jnp.float32))                   # subtract before upcast
    if col_mask_needed:
        e = jnp.where(col_valid, e, 0.0)
    lse = row_max.astype(jnp.float32) + jnp.log(jnp.sum(e, axis=-1, keepdims=True))

    nll = lse - picked
    valid = labels != ignore_index
    if (n_rows % tile_n) != 0:
        rows = lax.broadcasted_iota(jnp.int32, (tile_n, 1), 0) + i * tile_n
        valid = valid & (rows < n_rows)
    partial = jnp.sum(jnp.where(valid, nll, 0.0))
    _write_partial_slab(out_ref, partial)


def _ce_stream_kernel(logits_ref, labels_ref, out_ref, m_ref, l_ref, p_ref, *,
                      n_rows, n_cols, tile_n, tile_c, n_c_tiles, ignore_index):
    """Large vocab: stream class tiles with an online (flash-style) logsumexp."""
    i = pl.program_id(0)   # row-tile index   ("parallel")
    j = pl.program_id(1)   # class-tile index ("arbitrary", innermost reduction)

    @pl.when(j == 0)
    def _init():
        m_ref[...] = jnp.full_like(m_ref, -jnp.inf)
        l_ref[...] = jnp.zeros_like(l_ref)
        p_ref[...] = jnp.zeros_like(p_ref)

    x = logits_ref[...]                                      # (tile_n, tile_c)
    labels = labels_ref[...]                                 # (tile_n, 1) int32

    col = lax.broadcasted_iota(jnp.int32, (1, tile_c), 1) + j * tile_c   # global class ids
    col_mask_needed = (n_cols % tile_c) != 0                             # static branch

    # --- gather logits[row, label] (accumulated across class tiles) ----------
    picked = jnp.sum(jnp.where(col == labels, x, jnp.zeros_like(x)),
                     axis=-1, keepdims=True).astype(jnp.float32)
    p_ref[...] += picked

    # --- online logsumexp over class tiles -----------------------------------
    if col_mask_needed:
        col_valid = col < n_cols
        x_for_max = jnp.where(col_valid, x, jnp.finfo(x.dtype).min)
    else:
        x_for_max = x
    tile_max = jnp.max(x_for_max, axis=-1, keepdims=True).astype(jnp.float32)

    m_prev = m_ref[...]
    m_new = jnp.maximum(m_prev, tile_max)
    alpha = jnp.exp(m_prev - m_new)                          # (tile_n, 1)
    e = jnp.exp(x.astype(jnp.float32) - m_new)               # upcast only on the exp path
    if col_mask_needed:
        e = jnp.where(col_valid, e, 0.0)
    l_ref[...] = l_ref[...] * alpha + jnp.sum(e, axis=-1, keepdims=True)
    m_ref[...] = m_new

    # --- finalize: masked per-tile partial NLL sum ----------------------------
    @pl.when(j == n_c_tiles - 1)
    def _finalize():
        lse = m_ref[...] + jnp.log(l_ref[...])
        nll = lse - p_ref[...]
        valid = labels != ignore_index
        if (n_rows % tile_n) != 0:
            rows = lax.broadcasted_iota(jnp.int32, (tile_n, 1), 0) + i * tile_n
            valid = valid & (rows < n_rows)
        partial = jnp.sum(jnp.where(valid, nll, 0.0))
        _write_partial_slab(out_ref, partial)


def _vmem_budget():
    """Generation-aware (block_budget_bytes, vmem_limit_bytes)."""
    try:
        vmem = int(pltpu.get_tpu_info().vmem_capacity_bytes)
    except Exception:
        vmem = 64 * 1024 * 1024
    if vmem <= 96 * 1024 * 1024:                 # v7x-class: 64 MiB per TensorCore
        return 4 * 1024 * 1024, 48 * 1024 * 1024
    return 8 * 1024 * 1024, 96 * 1024 * 1024     # v5e/v6e: 128 MiB physical VMEM


def _pick_tiles(n, c, itemsize, sublane_pack, block_budget):
    c_pad = _round_up(c, 128)
    row_bytes = c_pad * itemsize
    n_pad = _round_up(n, sublane_pack)

    if row_bytes * sublane_pack <= block_budget:
        # Single pass over the class dim: grow tile_n until the block fills the budget
        # (>= ~2-4 MiB blocks amortize the ~0.35 us per-grid-step overhead).
        tile_c = c
        tile_n = (block_budget // row_bytes) // sublane_pack * sublane_pack
        tile_n = max(sublane_pack, min(tile_n, n_pad))
    else:
        # Stream the class dim: keep tile_n modest (lane-sparse (tile_n, 1) stats),
        # grow tile_c with the budget instead of a hard-coded value.
        tile_n = max(sublane_pack, min(256, n_pad))
        tile_c = (block_budget // (tile_n * itemsize)) // 128 * 128
        tile_c = max(128, min(tile_c, c_pad))

    # Keep grid_n >= 2 for decent-size N so the "parallel" row axis can shard across
    # both TensorCores on v7x (measured no-op on single-TC v5e/v6e).
    if n >= 2 * sublane_pack:
        half = _round_up(-(-n // 2), sublane_pack)
        tile_n = min(tile_n, half)
    return tile_n, tile_c


def erm_loss(logits, labels, *, tile_n=None, tile_c=None,
             ignore_index=_IGNORE_INDEX):
    """Pallas equivalent of ERMLoss().forward(logits, labels)."""
    n, c = logits.shape
    itemsize = jnp.dtype(logits.dtype).itemsize
    sublane_pack = max(8, 32 // max(1, itemsize))   # 8 f32 / 16 bf16 / 32 int8
    labels_i32 = labels.astype(jnp.int32)
    labels_2d = labels_i32.reshape(n, 1)

    block_budget, vmem_limit = _vmem_budget()
    auto_tn, auto_tc = _pick_tiles(n, c, itemsize, sublane_pack, block_budget)
    tile_n = auto_tn if tile_n is None else tile_n
    tile_c = auto_tc if tile_c is None else tile_c
    grid_n = -(-n // tile_n)
    grid_c = -(-c // tile_c)
    if grid_c == 1:
        tile_c = c   # full class dim in one block (legal for any c)

    cost = pl.CostEstimate(
        flops=5 * n * c,
        transcendentals=n * c + n,
        bytes_accessed=n * c * itemsize + n * 4 + grid_n * 8 * 128 * 4)

    if grid_c == 1:
        kernel = functools.partial(
            _ce_single_pass_kernel, n_rows=n, n_cols=c,
            tile_n=tile_n, tile_c=tile_c, ignore_index=ignore_index)
        grid_spec = pltpu.PrefetchScalarGridSpec(
            num_scalar_prefetch=0,
            grid=(grid_n,),
            in_specs=[
                pl.BlockSpec((tile_n, tile_c), lambda i: (i, 0)),
                pl.BlockSpec((tile_n, 1), lambda i: (i, 0)),
            ],
            out_specs=pl.BlockSpec((1, 8, 128), lambda i: (i, 0, 0)))
        dim_sem = ("parallel",)
    else:
        kernel = functools.partial(
            _ce_stream_kernel, n_rows=n, n_cols=c,
            tile_n=tile_n, tile_c=tile_c, n_c_tiles=grid_c,
            ignore_index=ignore_index)
        grid_spec = pltpu.PrefetchScalarGridSpec(
            num_scalar_prefetch=0,
            grid=(grid_n, grid_c),
            in_specs=[
                pl.BlockSpec((tile_n, tile_c), lambda i, j: (i, j)),
                pl.BlockSpec((tile_n, 1), lambda i, j: (i, 0)),
            ],
            out_specs=pl.BlockSpec((1, 8, 128), lambda i, j: (i, 0, 0)),
            scratch_shapes=[
                pltpu.VMEM((tile_n, 1), jnp.float32),   # running max
                pltpu.VMEM((tile_n, 1), jnp.float32),   # running sum(exp)
                pltpu.VMEM((tile_n, 1), jnp.float32),   # picked logit
            ])
        dim_sem = ("parallel", "arbitrary")

    partials = pl.pallas_call(
        kernel,
        out_shape=jax.ShapeDtypeStruct((grid_n, 8, 128), jnp.float32),
        grid_spec=grid_spec,
        compiler_params=pltpu.CompilerParams(
            dimension_semantics=dim_sem,
            vmem_limit_bytes=vmem_limit),
        cost_estimate=cost,
    )(logits, labels_2d)

    total = jnp.sum(partials)   # only [*, 0, 0] is nonzero -> exact, lane-dense reduce
    denom = jnp.sum((labels_i32 != ignore_index).astype(jnp.float32))
    nll = total / denom         # NaN if every label is ignored (matches PyTorch)
    return {"loss": nll, "nll": nll}


def _reference_ce(logits, labels, ignore_index=_IGNORE_INDEX):
    logits = logits.astype(jnp.float32)
    lse = jax.nn.logsumexp(logits, axis=-1)
    safe = jnp.where(labels == ignore_index, 0, labels)
    picked = jnp.take_along_axis(logits, safe[:, None], axis=-1)[:, 0]
    per_row = lse - picked
    valid = labels != ignore_index
    return jnp.sum(jnp.where(valid, per_row, 0.0)) / jnp.sum(valid.astype(jnp.float32))


if __name__ == "__main__":
    key = jax.random.PRNGKey(0)
    k1, k2, k3, k4, k5, k6 = jax.random.split(key, 6)

    # 1) Small demo shape consistent with the module: batch=8, classes=32 (single-pass path).
    N, C = 8, 32
    logits = jax.random.normal(k1, (N, C), dtype=jnp.float32)
    labels = jax.random.randint(k2, (N,), 0, C, dtype=jnp.int32)
    out = erm_loss(logits, labels)
    jax.block_until_ready(out["loss"])
    ref = _reference_ce(logits, labels)
    assert jnp.allclose(out["loss"], ref, atol=1e-4, rtol=1e-5), (out["loss"], ref)
    assert jnp.allclose(out["nll"], out["loss"])

    # 2) Streaming path: manual tiles, padded rows/cols + one ignored label.
    N2, C2 = 37, 300
    logits2 = jax.random.normal(k3, (N2, C2), dtype=jnp.float32)
    labels2 = jax.random.randint(k4, (N2,), 0, C2, dtype=jnp.int32)
    labels2 = labels2.at[5].set(_IGNORE_INDEX)
    out2 = erm_loss(logits2, labels2, tile_n=16, tile_c=128)
    jax.block_until_ready(out2["loss"])
    ref2 = _reference_ce(logits2, labels2)
    assert jnp.allclose(out2["loss"], ref2, atol=1e-4, rtol=1e-5), (out2["loss"], ref2)

    # 3) Auto-tiled single-pass path with >1 row tile (megacore split) + padded last row tile.
    N3, C3 = 200, 1000
    logits3 = jax.random.normal(k5, (N3, C3), dtype=jnp.float32)
    labels3 = jax.random.randint(k6, (N3,), 0, C3, dtype=jnp.int32)
    labels3 = labels3.at[0].set(_IGNORE_INDEX).at[123].set(_IGNORE_INDEX)
    out3 = erm_loss(logits3, labels3)
    jax.block_until_ready(out3["loss"])
    ref3 = _reference_ce(logits3, labels3)
    assert jnp.allclose(out3["loss"], ref3, atol=1e-4, rtol=1e-4), (out3["loss"], ref3)

    print("KERNEL_OK")
</pallas_src>

<mosaic_0001>
module attributes {stable_mosaic.version = 11 : i64} {
  func.func @_ce_single_pass_kernel(%arg0: i32, %arg1: memref<8x32xf32, #tpu.memory_space<vmem>>, %arg2: memref<8x1xi32, #tpu.memory_space<vmem>>, %arg3: memref<1x8x128xf32, #tpu.memory_space<vmem>>) attributes {dimension_semantics = [#tpu.dimension_semantics<parallel>], iteration_bounds = array<i64: 1>, scalar_prefetch = 0 : i64, scratch_operands = 0 : i64, tpu.core_type = #tpu.core_type<tc>, window_params = [{transform_indices = @transform_0, window_bounds = array<i64: 8, 32>}, {transform_indices = @transform_1, window_bounds = array<i64: 8, 1>}, {transform_indices = @transform_2, window_bounds = array<i64: 1, 8, 128>}]} {
    %c0 = arith.constant 0 : index
    %c0_0 = arith.constant 0 : index
    %0 = vector.load %arg1[%c0, %c0_0] : memref<8x32xf32, #tpu.memory_space<vmem>>, vector<8x32xf32>
    %c0_1 = arith.constant 0 : index
    %c0_2 = arith.constant 0 : index
    %1 = vector.load %arg2[%c0_1, %c0_2] : memref<8x1xi32, #tpu.memory_space<vmem>>, vector<8x1xi32>
    %2 = tpu.iota {dimensions = array<i32: 1>} : vector<1x32xi32>
    %3 = vector.broadcast %2 : vector<1x32xi32> to vector<8x32xi32>
    %4 = vector.broadcast %1 : vector<8x1xi32> to vector<8x32xi32>
    %5 = arith.cmpi eq, %3, %4 : vector<8x32xi32>
    %cst = arith.constant 0.000000e+00 : f32
    %6 = vector.broadcast %cst : f32 to vector<8x32xf32>
    %7 = arith.select %5, %0, %6 : vector<8x32xi1>, vector<8x32xf32>
    %cst_3 = arith.constant dense<0.000000e+00> : vector<8xf32>
    %8 = vector.multi_reduction <add>, %7, %cst_3 [1] : vector<8x32xf32> to vector<8xf32>
    %9 = vector.shape_cast %8 : vector<8xf32> to vector<8x1xf32>
    %cst_4 = arith.constant dense<0xFF800000> : vector<8xf32>
    %10 = vector.multi_reduction <maximumf>, %0, %cst_4 [1] : vector<8x32xf32> to vector<8xf32>
    %11 = vector.shape_cast %10 : vector<8xf32> to vector<8x1xf32>
    %12 = vector.broadcast %11 : vector<8x1xf32> to vector<8x32xf32>
    %13 = arith.subf %0, %12 : vector<8x32xf32>
    %14 = math.exp %13 : vector<8x32xf32>
    %cst_5 = arith.constant dense<0.000000e+00> : vector<8xf32>
    %15 = vector.multi_reduction <add>, %14, %cst_5 [1] : vector<8x32xf32> to vector<8xf32>
    %16 = vector.shape_cast %15 : vector<8xf32> to vector<8x1xf32>
    %17 = math.log %16 : vector<8x1xf32>
    %18 = arith.addf %11, %17 : vector<8x1xf32>
    %19 = arith.subf %18, %9 : vector<8x1xf32>
    %c-100_i32 = arith.constant -100 : i32
    %20 = vector.broadcast %c-100_i32 : i32 to vector<8x1xi32>
    %21 = arith.cmpi ne, %1, %20 : vector<8x1xi32>
    %cst_6 = arith.constant 0.000000e+00 : f32
    %22 = vector.broadcast %cst_6 : f32 to vector<8x1xf32>
    %23 = arith.select %21, %19, %22 : vector<8x1xi1>, vector<8x1xf32>
    %24 = vector.shape_cast %23 : vector<8x1xf32> to vector<1x8x1xf32>
    %cst_7 = arith.constant dense<0.000000e+00> : vector<1xf32>
    %25 = vector.multi_reduction <add>, %24, %cst_7 [1, 2] : vector<1x8x1xf32> to vector<1xf32>
    %26 = vector.shape_cast %25 : vector<1xf32> to vector<1x1x1xf32>
    %27 = vector.extract %26[0, 0, 0] : f32 from vector<1x1x1xf32>
    %28 = vector.broadcast %27 : f32 to vector<1x8x128xf32>
    %29 = tpu.iota {dimensions = array<i32: 1>} : vector<1x8x128xi32>
    %30 = tpu.iota {dimensions = array<i32: 2>} : vector<1x8x128xi32>
    %c0_i32 = arith.constant 0 : i32
    %31 = vector.broadcast %c0_i32 : i32 to vector<1x8x128xi32>
    %32 = arith.cmpi eq, %29, %31 : vector<1x8x128xi32>
    %c0_i32_8 = arith.constant 0 : i32
    %33 = vector.broadcast %c0_i32_8 : i32 to vector<1x8x128xi32>
    %34 = arith.cmpi eq, %30, %33 : vector<1x8x128xi32>
    %35 = arith.andi %32, %34 : vector<1x8x128xi1>
    %cst_9 = arith.constant 0.000000e+00 : f32
    %36 = vector.broadcast %cst_9 : f32 to vector<1x8x128xf32>
    %37 = arith.select %35, %28, %36 : vector<1x8x128xi1>, vector<1x8x128xf32>
    %c0_10 = arith.constant 0 : index
    %c0_11 = arith.constant 0 : index
    %c0_12 = arith.constant 0 : index
    %38 = vector.load %arg3[%c0_10, %c0_11, %c0_12] : memref<1x8x128xf32, #tpu.memory_space<vmem>>, vector<1x8x128xf32>
    tpu.vector_store %arg3[%c0_10, %c0_11, %c0_12], %37 {strides = array<i32>} : memref<1x8x128xf32, #tpu.memory_space<vmem>>, vector<1x8x128xf32>,
    return
  }
  func.func @transform_0(%arg0: i32) -> (i32, i32) {
    %c0_i32 = arith.constant 0 : i32
    %c0_i32_0 = arith.constant 0 : i32
    return %arg0, %c0_i32 : i32, i32
  }
  func.func @transform_1(%arg0: i32) -> (i32, i32) {
    %c0_i32 = arith.constant 0 : i32
    %c0_i32_0 = arith.constant 0 : i32
    return %arg0, %c0_i32 : i32, i32
  }
  func.func @transform_2(%arg0: i32) -> (i32, i32, i32) {
    %c0_i32 = arith.constant 0 : i32
    %c0_i32_0 = arith.constant 0 : i32
    %c0_i32_1 = arith.constant 0 : i32
    return %arg0, %c0_i32, %c0_i32_0 : i32, i32, i32
  }
}

</mosaic_0001>

<bundles_post_ra>
// kernel: tpu_custom_call.1
= control target key start
LH: loop header
LB: loop body
LE: loop exit
PB: predicated region body
PF: predicated region fallthrough
CT: control target
= control target key end

     0   :  { %vm21_vm0 = vcmask 261120   ;;  %s144_s0 = inlined_call_operand.vmem [shape: f32[8,32], index: 0, kind: input, shape index: {}]   ;;  %s145_s1 = inlined_call_operand.vmem [shape: s32[8,1], index: 1, kind: input, shape index: {}]   ;;  %s146_s2 = inlined_call_operand.hbm [shape: f32[1,8,128], index: 2, kind: output, shape index: {}]  }
   0x1   :  { %v12_v0 = vld [vmem:[%s144_s0] sm:$0xff] }
   0x2   :  { %7 = vsyncpa [#allocation3], 0  ;;  %v25_v1 = vsel %vm21_vm0, %v12_v0, -inf  ;;  %v106_v2 = vmov 0   ;;  %v13_v3 = vld [vmem:[%s145_s1] sm:$0xff]  ;;  %v14_v7 = vlaneseq  ;;  %vm40_vm3 = vcmask 7168  }
   0x3   :  { %77 = vset.pattern.permute.xlu0 %v106_v2  ;;  %vm38_vm2 = vcmp.ne.s32.totalorder %v13_v3, 4294967196  ;;  %s107_s0 = smov [#allocation2]  }
   0x4   :  { %26 = vmax.xlane.f32.xlu0 %v25_v1  ;;  %v15_v8 = vand.u32 127, %v14_v7  ;;  %v53_v29 = vshrl.u32 %v14_v7, 7  ;;  %s65_s1 = sshll.u32 %s107_s0, 4  ;;  %s66_s1 = int_to_ptr.vmem [resolvable:$true] %s65_s1 }
   0x5   :  { %s82_s14 = scalar_lea.vmem %s66_s1, 128  ;;  %p87_p1 = scmp.lt.s32.totalorder %s66_s1, %s66_s1 }
   0x6   :  { %vm54_vm4 = vcmp.eq.s32.totalorder %v53_v29, 0  ;;  %vm55_vm5 = vcmp.eq.s32.totalorder %v15_v8, 0  ;;  %p83_p0 = scmp.ne.s32.totalorder %s66_s1, %s82_s14  ;;  %p88_p2 = scmp.lt.s32.totalorder %s82_s14, %s82_s14 }
   0x7   :  { %vm56_vm6 = vmand %vm54_vm4, %vm55_vm5 }
   0x8   :  { %p89_p3 = por %p88_p2, %p87_p1 }
   0xa   :  { %p90_p4 = pnand %p89_p3, %p83_p0 }
  0x1a   :  { %17 = vperm.xlu0 %77, %v13_v3  }
  0x91   :  { %v27_v4 = vpop.xlane.xlu0 %26 }
  0x92   :  { %v28_v5 = vsub.f32 %v12_v0, %v27_v4 }
  0x94   :  { %v29_v6 = vmul.f32 1.442695, %v28_v5 }
  0x96   :  { %78 = vpow2.f32 %v29_v6 }
  0x99   :  { %v18_v9 = vpop.permute.xlu0 %17 }
  0x9a   :  { %vm19_vm1 = vcmp.eq.s32.totalorder %v15_v8, %v18_v9 }
  0x9b   :  { %v20_v11 = vsel %vm19_vm1, %v12_v0, 0.0 }
  0x9c   :  { %v22_v13 = vsel %vm21_vm0, %v20_v11, 0.0 }
  0xa0   :  { %v79_v10 = vpop.eup %78 }
  0xa1   :  { %v31_v12 = vsel %vm21_vm0, %v79_v10, 0.0 }
  0xa2   :  { %32 = vadd.xlane.f32.xlu1 %v31_v12 }
  0xa6   :  { %23 = vadd.xlane.f32.xlu1 %v22_v13 }
 0x12f   :  { %v33_v14 = vpop.xlane.xlu1 %32 }
 0x130   :  { %80 = vlog2.f32 %v33_v14 }
 0x133   :  { %v24_v17 = vpop.xlane.xlu1 %23 }
 0x13a   :  { %v81_v15 = vpop.eup %80 }
 0x13b   :  { %v35_v16 = vmul.f32 0.6931472, %v81_v15 }
 0x13d   :  { %v36_v18 = vadd.f32 %v35_v16, %v27_v4 }
 0x13f   :  { %v37_v19 = vsub.f32 %v36_v18, %v24_v17 }
 0x141   :  { %v39_v20 = vsel %vm38_vm2, %v37_v19, 0.0 }
 0x142   :  { %v41_v21 = vsel %vm40_vm3, %v39_v20, 0.0 }
 0x143   :  { %42 = vadd.xlane.f32.xlu1 %v41_v21 }
 0x1d0   :  { %v43_v22 = vpop.xlane.xlu1 %42 }
 0x1d1   :  { %v44_v23 = vrot.slane %v43_v22, 4 }
 0x1d3   :  { %v45_v24 = vadd.f32 %v44_v23, %v43_v22 }
 0x1d5   :  { %v46_v25 = vrot.slane %v45_v24, 2 }
 0x1d7   :  { %v47_v26 = vadd.f32 %v46_v25, %v45_v24 }
 0x1d9   :  { %v48_v27 = vrot.slane %v47_v26, 1 }
 0x1db   :  { %v49_v28 = vadd.f32 %v48_v27, %v47_v26 }
 0x1dd   :  { %73 = vpush %v49_v28 }
 0x20e   :  { %s74_s13 = spop %73 }
 0x20f   :  { %v51_v30 = vstv %s74_s13 }
 0x210   :  { %v57_v31 = vsel %vm56_vm6, %v51_v30, 0.0 }
 0x211   :  { %58 = vst [vmem:[#allocation2] sm:$0xff] %v57_v31 }
 0x212   :  { %93 = shalt.err (!%p90_p4)
}
 0x213   :  { %s94_s17 = scalar_lea.hbm %s146_s2, 128 }
 0x214   :  { %p95_p5 = scmp.ne.s32.totalorder %s146_s2, %s94_s17  ;;  %p98_p6 = scmp.lt.u32.totalorder %s94_s17, %s146_s2 }
 0x216   :  { %p100_p7 = pnand %p98_p6, %p95_p5 }
 0x218   :  { %103 = shalt.err (!%p100_p7)
}
 0x219   :  { %68 = dma.vmem_to_hbm [thread:$0]  %s66_s1, 128, %s146_s2, [#allocation3]  }
 0x21a   :  { %104 = dma.done.wait [#allocation3], 128  }
 0x21b   :  { %105 = vsyncadd [#allocation3], 4294967168 }
 0x21c   :  { %72 = vsyncpa [#allocation3], 1 }

</bundles_post_ra>
